<compile_context>
chip_gen: v7x
topology: tpu7x:2x2x1
jax: 0.10.0
libtpu: 0.0.40
codegen_flags: <defaults>
</compile_context>

<pallas_src>
import math
import functools

import jax
import jax.numpy as jnp
from jax.experimental import pallas as pl
from jax.experimental.pallas import tpu as pltpu

EPS = 1e-8
IS_CHARGED = True          # charge embedding -> 2 channels (positive / negative)
NEG_BIG = -1e30            # logit value for padded (masked) atom rows

# Explicit scoped-VMEM budget (well above actual use at these tile sizes; safe on
# v5e/v6e (128 MiB) and v7x (64 MiB physical)).
VMEM_LIMIT = 32 * 1024 * 1024


def _silu(x):
    return x * jax.nn.sigmoid(x)


def _round_up(x, m):
    return ((x + m - 1) // m) * m


# --------------------------------------------------------------------------------------
# Pass 1: q projection + logits + online global softmax statistics (grid axis "arbitrary")
# --------------------------------------------------------------------------------------
def _stats_kernel(af_ref, k_ref, oh_ref, mask_ref, wq_ref, bq_ref,
                  logit_ref, m_ref, s_ref,
                  m_sc, s_sc):
    """
    af_ref   : [TN, F]  bf16 atomic features tile
    k_ref    : [TN, F]  f32  per-atom key (already scaled by 1/sqrt(F))
    oh_ref   : [TN, B]  f32  one-hot(batch_seg) tile (zero rows for padding)
    mask_ref : [TN, 1]  f32  1 = valid atom, 0 = padding
    wq_ref   : [F, F]   bf16 (resident), bq_ref: [1, F] f32 (resident)
    logit_ref: [TN, 1]  f32  per-atom attention logit (output, per tile)
    m_ref    : [1, 1]   f32  global max logit (written on last tile)
    s_ref    : [1, B]   f32  per-molecule sum of exp(logit - m) (written on last tile)
    m_sc/s_sc: VMEM scratch accumulators (persist across the sequential grid)
    """
    i = pl.program_id(0)

    @pl.when(i == 0)
    def _():
        m_sc[...] = jnp.full(m_sc.shape, NEG_BIG, m_sc.dtype)
        s_sc[...] = jnp.zeros_like(s_sc)

    # q = linear_q(atomic_features)  -- bf16 MXU operands, f32 accumulation
    q = jnp.dot(af_ref[...], wq_ref[...], preferred_element_type=jnp.float32) + bq_ref[...]

    # logits = sum(k * q, -1); 1/sqrt(F) was folded into k in the wrapper.  Keep f32.
    l = jnp.sum(k_ref[...] * q, axis=-1, keepdims=True)                 # [TN, 1]
    l = jnp.where(mask_ref[...] > 0.5, l, NEG_BIG)                      # mask padded rows
    logit_ref[...] = l

    # Online softmax statistics: running global max + per-molecule exp-sums.
    m_old = m_sc[...]                                                   # [1, 1]
    m_new = jnp.maximum(m_old, jnp.max(l, axis=0, keepdims=True))       # [1, 1]
    corr = jnp.exp(m_old - m_new)                                       # [1, 1]
    p = jnp.exp(l - m_new)                                              # [TN, 1]
    # segment-sum over this tile: [B] = oh.T @ p, done as a cheap VPU/XLU reduction
    s_tile = jnp.sum(oh_ref[...] * p, axis=0, keepdims=True)            # [1, B]
    s_sc[...] = s_sc[...] * corr + s_tile
    m_sc[...] = m_new

    @pl.when(i == pl.num_programs(0) - 1)
    def _():
        m_ref[...] = m_sc[...]
        s_ref[...] = s_sc[...]


# --------------------------------------------------------------------------------------
# Pass 2: per-tile normalization + ResidualMLP (grid axis "parallel" -> megacore on v7x)
# --------------------------------------------------------------------------------------
def _mlp_kernel(logit_ref, v_ref, oh_ref, m_ref, s_ref,
                w1_ref, w2_ref, wout_ref, out_ref, *, num_res, eps):
    """
    logit_ref: [TN, 1] f32, v_ref: [TN, F] f32, oh_ref: [TN, B] f32
    m_ref    : [1, 1] f32 global max, s_ref: [1, B] f32 per-molecule exp-sums
    w1/w2    : [R, F, F] bf16 (resident), wout: [F, F] bf16 (resident)
    out_ref  : [TN, F] f32
    """
    l = logit_ref[...]                                                  # [TN, 1]
    p = jnp.exp(l - m_ref[...])                                         # [TN, 1] (0 for pads)
    z = jnp.sum(s_ref[...], axis=-1, keepdims=True)                     # [1, 1]  softmax denom
    inv_z = pl.reciprocal(z, approx=True)

    a = p * inv_z                                                       # softmax over dim 0
    # anorm[n] = segment_sum(a)[seg[n]] = (oh @ S) / Z  (thin [TN,B] gather, no N x N)
    anorm = jnp.sum(oh_ref[...] * s_ref[...], axis=-1, keepdims=True) * inv_z
    coeff = a * pl.reciprocal(anorm + eps, approx=True)                 # a / (anorm + eps), f32
    x = coeff * v_ref[...]                                              # [TN, F] f32

    # ResidualMLP: R pre-activation residual blocks, then final linear (all bias-free).
    # bf16 MXU operands, f32 accumulation.
    for r in range(num_res):
        h = _silu(x).astype(jnp.bfloat16)
        y = jnp.dot(h, w1_ref[r], preferred_element_type=jnp.float32)
        y = jnp.dot(_silu(y).astype(jnp.bfloat16), w2_ref[r],
                    preferred_element_type=jnp.float32)
        x = x + y
    out_ref[...] = jnp.dot(_silu(x).astype(jnp.bfloat16), wout_ref[...],
                           preferred_element_type=jnp.float32).astype(out_ref.dtype)


# --------------------------------------------------------------------------------------
# Wrapper
# --------------------------------------------------------------------------------------
def electronic_embedding_forward(atomic_features, electronic_feature, batch_seg,
                                 num_batch, params, *, tile_n=256):
    """ElectronicEmbedding forward. tile_n = atom rows per block (use ~half on v7x)."""
    N, F_ = atomic_features.shape
    C = params["wk"].shape[0]
    R = params["w1"].shape[0]
    B = num_batch
    scale = 1.0 / math.sqrt(float(F_))

    # --- wrapper glue (tiny, MXU-degenerate in-kernel): electronic channels, k/v
    #     projections with contraction dim C~2, and the batch_seg gather. ---
    if C == 2:
        e = jax.nn.relu(jnp.stack([electronic_feature, -electronic_feature], axis=-1))
    else:
        e = jnp.abs(electronic_feature)[:, None]
    e = e.astype(jnp.float32)
    enorm_e = e / jnp.maximum(e, 1.0)
    k_mol = (enorm_e @ params["wk"]) * scale          # fold 1/sqrt(F) into k
    v_mol = e @ params["wv"]
    k = k_mol[batch_seg].astype(jnp.float32)          # [N, F]
    v = v_mol[batch_seg].astype(jnp.float32)          # [N, F]
    onehot = (batch_seg[:, None] == jnp.arange(B)[None, :]).astype(jnp.float32)

    # --- pad atoms to a multiple of the row tile (masked out inside the kernel) ---
    tn = min(_round_up(tile_n, 8), _round_up(N, 8))
    n_pad = _round_up(N, tn)
    pad = n_pad - N

    def padn(x):
        return jnp.pad(x, ((0, pad),) + ((0, 0),) * (x.ndim - 1)) if pad else x

    af = padn(atomic_features.astype(jnp.float32)).astype(jnp.bfloat16)
    k = padn(k)
    v = padn(v)
    oh = padn(onehot)
    mask = padn(jnp.ones((N, 1), jnp.float32))

    # weights: cast MXU operands to bf16 once here
    wq = params["wq"].astype(jnp.bfloat16)
    bq = params["bq"].astype(jnp.float32)
    w1 = params["w1"].astype(jnp.bfloat16)
    w2 = params["w2"].astype(jnp.bfloat16)
    wout = params["wout"].astype(jnp.bfloat16)

    T = n_pad // tn
    row = lambda i: (i, 0)
    const2 = lambda i: (0, 0)
    const3 = lambda i: (0, 0, 0)

    # ---- pass 1: logits + global softmax stats (sequential accumulation) ----
    logits, m, s = pl.pallas_call(
        _stats_kernel,
        grid=(T,),
        in_specs=[
            pl.BlockSpec((tn, F_), row),       # atomic features (bf16)
            pl.BlockSpec((tn, F_), row),       # k (f32, pre-scaled)
            pl.BlockSpec((tn, B), row),        # one-hot segment map
            pl.BlockSpec((tn, 1), row),        # valid-atom mask
            pl.BlockSpec((F_, F_), const2),    # wq (resident)
            pl.BlockSpec((1, F_), const2),     # bq (resident)
        ],
        out_specs=[
            pl.BlockSpec((tn, 1), row),        # per-atom logits
            pl.BlockSpec((1, 1), const2),      # global max
            pl.BlockSpec((1, B), const2),      # per-molecule sum(exp)
        ],
        out_shape=[
            jax.ShapeDtypeStruct((n_pad, 1), jnp.float32),
            jax.ShapeDtypeStruct((1, 1), jnp.float32),
            jax.ShapeDtypeStruct((1, B), jnp.float32),
        ],
        scratch_shapes=[pltpu.VMEM((1, 1), jnp.float32),
                        pltpu.VMEM((1, B), jnp.float32)],
        compiler_params=pltpu.CompilerParams(
            dimension_semantics=("arbitrary",),
            vmem_limit_bytes=VMEM_LIMIT),
    )(af, k, oh, mask, wq, bq)

    # ---- pass 2: normalization + ResidualMLP (tile-parallel) ----
    out = pl.pallas_call(
        functools.partial(_mlp_kernel, num_res=R, eps=EPS),
        grid=(T,),
        in_specs=[
            pl.BlockSpec((tn, 1), row),        # logits
            pl.BlockSpec((tn, F_), row),       # v
            pl.BlockSpec((tn, B), row),        # one-hot segment map
            pl.BlockSpec((1, 1), const2),      # global max
            pl.BlockSpec((1, B), const2),      # per-molecule sum(exp)
            pl.BlockSpec((R, F_, F_), const3), # w1 (resident)
            pl.BlockSpec((R, F_, F_), const3), # w2 (resident)
            pl.BlockSpec((F_, F_), const2),    # wout (resident)
        ],
        out_specs=pl.BlockSpec((tn, F_), row),
        out_shape=jax.ShapeDtypeStruct((n_pad, F_), jnp.float32),
        compiler_params=pltpu.CompilerParams(
            dimension_semantics=("parallel",),
            vmem_limit_bytes=VMEM_LIMIT),
    )(logits, v, oh, m, s, w1, w2, wout)

    return out[:N]


# --------------------------------------------------------------------------------------
# References
# --------------------------------------------------------------------------------------
def reference_forward(atomic_features, electronic_feature, batch_seg, num_batch, params,
                      *, match_bf16=False):
    """Pure-JAX reference mirroring the PyTorch module.

    match_bf16=True rounds the matmul operands to bf16 (f32 accumulation) to match the
    kernel's MXU numerics; match_bf16=False is the plain f32 reference.
    """
    F_ = atomic_features.shape[1]

    def mm(x, w):
        if match_bf16:
            return jnp.dot(x.astype(jnp.bfloat16), w.astype(jnp.bfloat16),
                           preferred_element_type=jnp.float32)
        return jnp.dot(x, w)

    q = mm(atomic_features, params["wq"]) + params["bq"][0]
    if params["wk"].shape[0] == 2:
        e = jax.nn.relu(jnp.stack([electronic_feature, -electronic_feature], axis=-1))
    else:
        e = jnp.abs(electronic_feature)[:, None]
    e = e.astype(jnp.float32)
    enorm = jnp.maximum(e, 1.0)
    k = ((e / enorm) @ params["wk"])[batch_seg]
    v = (e @ params["wv"])[batch_seg]
    w = jnp.sum(k * q, axis=-1) / math.sqrt(float(F_))
    a = jax.nn.softmax(w, axis=0)
    anorm = jax.ops.segment_sum(a, batch_seg, num_segments=num_batch)[batch_seg]
    x = (a / (anorm + EPS))[:, None] * v
    for r in range(params["w1"].shape[0]):
        y = mm(_silu(x), params["w1"][r])
        y = mm(_silu(y), params["w2"][r])
        x = x + y
    return mm(_silu(x), params["wout"])


def make_params(key, num_features, num_residual, num_channels):
    """Deterministic synthetic init (shapes match the torch module; values are synthetic)."""
    ks = jax.random.split(key, 7)
    s = 0.1
    return {
        "wq": s * jax.random.normal(ks[0], (num_features, num_features), jnp.float32),
        "bq": s * jax.random.normal(ks[1], (1, num_features), jnp.float32),
        "wk": s * jax.random.normal(ks[2], (num_channels, num_features), jnp.float32),
        "wv": s * jax.random.normal(ks[3], (num_channels, num_features), jnp.float32),
        "w1": s * jax.random.normal(ks[4], (num_residual, num_features, num_features), jnp.float32),
        "w2": s * jax.random.normal(ks[5], (num_residual, num_features, num_features), jnp.float32),
        "wout": s * jax.random.normal(ks[6], (num_features, num_features), jnp.float32),
    }


if __name__ == "__main__":
    N = 21            # atoms in batch (not a tile multiple -> exercises padding/mask)
    Fdim = 128        # num_features (lane-dense)
    B = 3             # num_batch (molecules)
    R = 2             # num_residual
    C = 2 if IS_CHARGED else 1

    key = jax.random.PRNGKey(0)
    k_af, k_par = jax.random.split(key, 2)

    atomic_features = jax.random.normal(k_af, (N, Fdim), jnp.float32)
    electronic_feature = jnp.array([1.0, -1.0, 2.0], jnp.float32)          # molecular charges
    batch_seg = jnp.array([0] * 8 + [1] * 6 + [2] * 7, jnp.int32)          # atom -> molecule

    params = make_params(k_par, Fdim, R, C)

    # tile_n=8 -> 3 row tiles: exercises the multi-tile online-softmax accumulation path.
    out = electronic_embedding_forward(atomic_features, electronic_feature, batch_seg, B,
                                       params, tile_n=8)
    out = jax.block_until_ready(out)
    assert out.shape == (N, Fdim)
    assert bool(jnp.all(jnp.isfinite(out)))

    ref_matched = reference_forward(atomic_features, electronic_feature, batch_seg, B,
                                    params, match_bf16=True)
    ref_f32 = reference_forward(atomic_features, electronic_feature, batch_seg, B,
                                params, match_bf16=False)

    def norm_err(a, b):
        return float(jnp.max(jnp.abs(a - b)) / (jnp.max(jnp.abs(b)) + 1e-12))

    e_matched = norm_err(out, ref_matched)   # logic check (same bf16 operand rounding)
    e_f32 = norm_err(out, ref_f32)           # semantic check vs. plain f32 math
    assert e_matched < 2e-2, f"kernel does not match precision-matched reference ({e_matched})"
    assert e_f32 < 6e-2, f"kernel does not match f32 reference ({e_f32})"

    print("KERNEL_OK")
</pallas_src>

<mosaic_0001>
module attributes {stable_mosaic.version = 11 : i64} {
  func.func @_stats_kernel(%arg0: i32, %arg1: memref<8x128xbf16, #tpu.memory_space<vmem>>, %arg2: memref<8x128xf32, #tpu.memory_space<vmem>>, %arg3: memref<8x3xf32, #tpu.memory_space<vmem>>, %arg4: memref<8x1xf32, #tpu.memory_space<vmem>>, %arg5: memref<128x128xbf16, #tpu.memory_space<vmem>>, %arg6: memref<1x128xf32, #tpu.memory_space<vmem>>, %arg7: memref<8x1xf32, #tpu.memory_space<vmem>>, %arg8: memref<1x1xf32, #tpu.memory_space<vmem>>, %arg9: memref<1x3xf32, #tpu.memory_space<vmem>>, %arg10: memref<1x1xf32, #tpu.memory_space<vmem>>, %arg11: memref<1x3xf32, #tpu.memory_space<vmem>>) attributes {dimension_semantics = [#tpu.dimension_semantics<arbitrary>], iteration_bounds = array<i64: 3>, scalar_prefetch = 0 : i64, scratch_operands = 2 : i64, tpu.core_type = #tpu.core_type<tc>, window_params = [{transform_indices = @transform_0, window_bounds = array<i64: 8, 128>}, {transform_indices = @transform_1, window_bounds = array<i64: 8, 128>}, {transform_indices = @transform_2, window_bounds = array<i64: 8, 3>}, {transform_indices = @transform_3, window_bounds = array<i64: 8, 1>}, {pipeline_mode = #tpu.pipeline_mode<synchronous>, transform_indices = @transform_4, window_bounds = array<i64: 128, 128>}, {pipeline_mode = #tpu.pipeline_mode<synchronous>, transform_indices = @transform_5, window_bounds = array<i64: 1, 128>}, {transform_indices = @transform_6, window_bounds = array<i64: 8, 1>}, {pipeline_mode = #tpu.pipeline_mode<synchronous>, transform_indices = @transform_7, window_bounds = array<i64: 1, 1>}, {pipeline_mode = #tpu.pipeline_mode<synchronous>, transform_indices = @transform_8, window_bounds = array<i64: 1, 3>}]} {
    %c0_i32 = arith.constant 0 : i32
    %0 = arith.cmpi eq, %arg0, %c0_i32 : i32
    %1 = arith.extui %0 : i1 to i32
    %c0_i32_0 = arith.constant 0 : i32
    %2 = arith.cmpi ne, %1, %c0_i32_0 : i32
    scf.if %2 {
      %cst_28 = arith.constant -1.000000e+30 : f32
      %42 = vector.broadcast %cst_28 : f32 to vector<1x1xf32>
      %c0_29 = arith.constant 0 : index
      %c0_30 = arith.constant 0 : index
      %43 = vector.load %arg10[%c0_29, %c0_30] : memref<1x1xf32, #tpu.memory_space<vmem>>, vector<1x1xf32>
      tpu.vector_store %arg10[%c0_29, %c0_30], %42 {strides = array<i32>} : memref<1x1xf32, #tpu.memory_space<vmem>>, vector<1x1xf32>,
      %cst_31 = arith.constant 0.000000e+00 : f32
      %44 = vector.broadcast %cst_31 : f32 to vector<1x3xf32>
      %c0_32 = arith.constant 0 : index
      %c0_33 = arith.constant 0 : index
      %45 = vector.load %arg11[%c0_32, %c0_33] : memref<1x3xf32, #tpu.memory_space<vmem>>, vector<1x3xf32>
      tpu.vector_store %arg11[%c0_32, %c0_33], %44 {strides = array<i32>} : memref<1x3xf32, #tpu.memory_space<vmem>>, vector<1x3xf32>,
    } else {
    }
    %c0 = arith.constant 0 : index
    %c0_1 = arith.constant 0 : index
    %3 = vector.load %arg1[%c0, %c0_1] : memref<8x128xbf16, #tpu.memory_space<vmem>>, vector<8x128xbf16>
    %c0_2 = arith.constant 0 : index
    %c0_3 = arith.constant 0 : index
    %4 = vector.load %arg5[%c0_2, %c0_3] : memref<128x128xbf16, #tpu.memory_space<vmem>>, vector<128x128xbf16>
    %cst = arith.constant dense<0.000000e+00> : vector<8x128xf32>
    %5 = tpu.matmul %3, %4, %cst {dimension_numbers = #tpu.dot_dimension_numbers<[1], [0], [0], [1], [0, 0, 1, 1], [], []>} : vector<8x128xbf16>, vector<128x128xbf16>, vector<8x128xf32> -> vector<8x128xf32>
    %c0_4 = arith.constant 0 : index
    %c0_5 = arith.constant 0 : index
    %6 = vector.load %arg6[%c0_4, %c0_5] : memref<1x128xf32, #tpu.memory_space<vmem>>, vector<1x128xf32>
    %7 = vector.broadcast %6 : vector<1x128xf32> to vector<8x128xf32>
    %8 = arith.addf %5, %7 : vector<8x128xf32>
    %c0_6 = arith.constant 0 : index
    %c0_7 = arith.constant 0 : index
    %9 = vector.load %arg2[%c0_6, %c0_7] : memref<8x128xf32, #tpu.memory_space<vmem>>, vector<8x128xf32>
    %10 = arith.mulf %9, %8 : vector<8x128xf32>
    %cst_8 = arith.constant dense<0.000000e+00> : vector<8xf32>
    %11 = vector.multi_reduction <add>, %10, %cst_8 [1] : vector<8x128xf32> to vector<8xf32>
    %12 = vector.shape_cast %11 : vector<8xf32> to vector<8x1xf32>
    %c0_9 = arith.constant 0 : index
    %c0_10 = arith.constant 0 : index
    %13 = vector.load %arg4[%c0_9, %c0_10] : memref<8x1xf32, #tpu.memory_space<vmem>>, vector<8x1xf32>
    %cst_11 = arith.constant 5.000000e-01 : f32
    %14 = vector.broadcast %cst_11 : f32 to vector<8x1xf32>
    %15 = arith.cmpf ogt, %13, %14 : vector<8x1xf32>
    %cst_12 = arith.constant -1.000000e+30 : f32
    %16 = vector.broadcast %cst_12 : f32 to vector<8x1xf32>
    %17 = arith.select %15, %12, %16 : vector<8x1xi1>, vector<8x1xf32>
    %c0_13 = arith.constant 0 : index
    %c0_14 = arith.constant 0 : index
    %18 = vector.load %arg7[%c0_13, %c0_14] : memref<8x1xf32, #tpu.memory_space<vmem>>, vector<8x1xf32>
    tpu.vector_store %arg7[%c0_13, %c0_14], %17 {strides = array<i32>} : memref<8x1xf32, #tpu.memory_space<vmem>>, vector<8x1xf32>,
    %c0_15 = arith.constant 0 : index
    %c0_16 = arith.constant 0 : index
    %19 = vector.load %arg10[%c0_15, %c0_16] : memref<1x1xf32, #tpu.memory_space<vmem>>, vector<1x1xf32>
    %cst_17 = arith.constant dense<0xFF800000> : vector<1xf32>
    %20 = vector.multi_reduction <maximumf>, %17, %cst_17 [0] : vector<8x1xf32> to vector<1xf32>
    %21 = vector.shape_cast %20 : vector<1xf32> to vector<1x1xf32>
    %22 = arith.maximumf %19, %21 : vector<1x1xf32>
    %23 = arith.subf %19, %22 : vector<1x1xf32>
    %24 = math.exp %23 : vector<1x1xf32>
    %25 = vector.broadcast %22 : vector<1x1xf32> to vector<8x1xf32>
    %26 = arith.subf %17, %25 : vector<8x1xf32>
    %27 = math.exp %26 : vector<8x1xf32>
    %c0_18 = arith.constant 0 : index
    %c0_19 = arith.constant 0 : index
    %28 = vector.load %arg3[%c0_18, %c0_19] : memref<8x3xf32, #tpu.memory_space<vmem>>, vector<8x3xf32>
    %29 = vector.broadcast %27 : vector<8x1xf32> to vector<8x3xf32>
    %30 = arith.mulf %28, %29 : vector<8x3xf32>
    %cst_20 = arith.constant dense<0.000000e+00> : vector<3xf32>
    %31 = vector.multi_reduction <add>, %30, %cst_20 [0] : vector<8x3xf32> to vector<3xf32>
    %32 = vector.shape_cast %31 : vector<3xf32> to vector<1x3xf32>
    %c0_21 = arith.constant 0 : index
    %c0_22 = arith.constant 0 : index
    %33 = vector.load %arg11[%c0_21, %c0_22] : memref<1x3xf32, #tpu.memory_space<vmem>>, vector<1x3xf32>
    %34 = vector.broadcast %24 : vector<1x1xf32> to vector<1x3xf32>
    %35 = arith.mulf %33, %34 : vector<1x3xf32>
    %36 = arith.addf %35, %32 : vector<1x3xf32>
    %c0_23 = arith.constant 0 : index
    %c0_24 = arith.constant 0 : index
    %37 = vector.load %arg11[%c0_23, %c0_24] : memref<1x3xf32, #tpu.memory_space<vmem>>, vector<1x3xf32>
    tpu.vector_store %arg11[%c0_23, %c0_24], %36 {strides = array<i32>} : memref<1x3xf32, #tpu.memory_space<vmem>>, vector<1x3xf32>,
    %c0_25 = arith.constant 0 : index
    %c0_26 = arith.constant 0 : index
    %38 = vector.load %arg10[%c0_25, %c0_26] : memref<1x1xf32, #tpu.memory_space<vmem>>, vector<1x1xf32>
    tpu.vector_store %arg10[%c0_25, %c0_26], %22 {strides = array<i32>} : memref<1x1xf32, #tpu.memory_space<vmem>>, vector<1x1xf32>,
    %c2_i32 = arith.constant 2 : i32
    %39 = arith.cmpi eq, %arg0, %c2_i32 : i32
    %40 = arith.extui %39 : i1 to i32
    %c0_i32_27 = arith.constant 0 : i32
    %41 = arith.cmpi ne, %40, %c0_i32_27 : i32
    scf.if %41 {
      %c0_28 = arith.constant 0 : index
      %c0_29 = arith.constant 0 : index
      %42 = vector.load %arg10[%c0_28, %c0_29] : memref<1x1xf32, #tpu.memory_space<vmem>>, vector<1x1xf32>
      %c0_30 = arith.constant 0 : index
      %c0_31 = arith.constant 0 : index
      %43 = vector.load %arg8[%c0_30, %c0_31] : memref<1x1xf32, #tpu.memory_space<vmem>>, vector<1x1xf32>
      tpu.vector_store %arg8[%c0_30, %c0_31], %42 {strides = array<i32>} : memref<1x1xf32, #tpu.memory_space<vmem>>, vector<1x1xf32>,
      %c0_32 = arith.constant 0 : index
      %c0_33 = arith.constant 0 : index
      %44 = vector.load %arg11[%c0_32, %c0_33] : memref<1x3xf32, #tpu.memory_space<vmem>>, vector<1x3xf32>
      %c0_34 = arith.constant 0 : index
      %c0_35 = arith.constant 0 : index
      %45 = vector.load %arg9[%c0_34, %c0_35] : memref<1x3xf32, #tpu.memory_space<vmem>>, vector<1x3xf32>
      tpu.vector_store %arg9[%c0_34, %c0_35], %44 {strides = array<i32>} : memref<1x3xf32, #tpu.memory_space<vmem>>, vector<1x3xf32>,
    } else {
    }
    return
  }
  func.func @transform_0(%arg0: i32) -> (i32, i32) {
    %c0_i32 = arith.constant 0 : i32
    %c0_i32_0 = arith.constant 0 : i32
    return %arg0, %c0_i32 : i32, i32
  }
  func.func @transform_1(%arg0: i32) -> (i32, i32) {
    %c0_i32 = arith.constant 0 : i32
    %c0_i32_0 = arith.constant 0 : i32
    return %arg0, %c0_i32 : i32, i32
  }
  func.func @transform_2(%arg0: i32) -> (i32, i32) {
    %c0_i32 = arith.constant 0 : i32
    %c0_i32_0 = arith.constant 0 : i32
    return %arg0, %c0_i32 : i32, i32
  }
  func.func @transform_3(%arg0: i32) -> (i32, i32) {
    %c0_i32 = arith.constant 0 : i32
    %c0_i32_0 = arith.constant 0 : i32
    return %arg0, %c0_i32 : i32, i32
  }
  func.func @transform_4(%arg0: i32) -> (i32, i32) {
    %c0_i32 = arith.constant 0 : i32
    %c0_i32_0 = arith.constant 0 : i32
    %c0_i32_1 = arith.constant 0 : i32
    return %c0_i32, %c0_i32_0 : i32, i32
  }
  func.func @transform_5(%arg0: i32) -> (i32, i32) {
    %c0_i32 = arith.constant 0 : i32
    %c0_i32_0 = arith.constant 0 : i32
    %c0_i32_1 = arith.constant 0 : i32
    return %c0_i32, %c0_i32_0 : i32, i32
  }
  func.func @transform_6(%arg0: i32) -> (i32, i32) {
    %c0_i32 = arith.constant 0 : i32
    %c0_i32_0 = arith.constant 0 : i32
    return %arg0, %c0_i32 : i32, i32
  }
  func.func @transform_7(%arg0: i32) -> (i32, i32) {
    %c0_i32 = arith.constant 0 : i32
    %c0_i32_0 = arith.constant 0 : i32
    %c0_i32_1 = arith.constant 0 : i32
    return %c0_i32, %c0_i32_0 : i32, i32
  }
  func.func @transform_8(%arg0: i32) -> (i32, i32) {
    %c0_i32 = arith.constant 0 : i32
    %c0_i32_0 = arith.constant 0 : i32
    %c0_i32_1 = arith.constant 0 : i32
    return %c0_i32, %c0_i32_0 : i32, i32
  }
}

</mosaic_0001>

<bundles_post_ra>
// kernel: tpu_custom_call.1
= control target key start
LH: loop header
LB: loop body
LE: loop exit
PB: predicated region body
PF: predicated region fallthrough
CT: control target
= control target key end

     0   :  { %14 = vsyncpa [#allocation5], 0  ;;  %s1343_s0 = inlined_call_operand.hbm [shape: bf16[24,128], index: 0, kind: input, shape index: {}]   ;;  %s1344_s1 = inlined_call_operand.hbm [shape: f32[24,128], index: 1, kind: input, shape index: {}]   ;;  %s1345_s2 = inlined_call_operand.vmem [shape: f32[24,3], index: 2, kind: input, shape index: {}]   ;;  %s1346_s3 = inlined_call_operand.vmem [shape: f32[24,1], index: 3, kind: input, shape index: {}]   ;;  %s1347_s4 = inlined_call_operand.vmem [shape: bf16[128,128], index: 4, kind: input, shape index: {}]   ;;  %s1348_s5 = inlined_call_operand.vmem [shape: f32[1,128], index: 5, kind: input, shape index: {}]   ;;  %s1349_s6 = inlined_call_operand.vmem [shape: f32[24,1], index: 6, kind: output, shape index: {0}]   ;;  %s1350_s7 = inlined_call_operand.hbm [shape: f32[1,1], index: 7, kind: output, shape index: {1}]   ;;  %s1351_s8 = inlined_call_operand.hbm [shape: f32[1,3], index: 8, kind: output, shape index: {2}]  }
   0x1   :  { %16 = vsyncpa [#allocation5 + $0x1], 0 }
   0x2   :  { %17 = vsyncpa [#allocation8], 0 }
   0x3   :  { %19 = vsyncpa [#allocation8 + $0x1], 0 }
   0x4   :  { %20 = vsyncpa [#allocation6], 0 }
   0x5   :  { %21 = vsyncpa [#allocation11], 0  ;;  %s1087_s27 = smov 0   ;;  %s1089_s28 = smov 0  }
   0x6   :  { %s1091_s29 = smov 0   ;;  %s1093_s30 = smov 0  }
   0x7 LB: > { %s1106_s9 = sadd.s32 4294967295, %s1031_s30   ;;  %s1109_s10 = sadd.s32 1, %s1031_s30   ;;  %s1031_s30 = sphi %s1093_s30, %s1363_s30   ;;  %s1027_s29 = sphi %s1091_s29, %s1362_s29   ;;  %s1023_s28 = sphi %s1089_s28, %s1361_s28   ;;  %s1019_s27 = sphi %s1087_s27, %s1360_s27  }
   0x8   : > { %s31_s11 = ssub.s32 %s1031_s30, %s1109_s10  ;;  %s34_s12 = sadd.s32 1, %s1027_s29 }
   0x9   : > { %p32_p0 = scmp.eq.s32.totalorder %s31_s11, 0  ;;  %p41_p1 = scmp.ne.s32.totalorder %s1027_s29, %s1023_s28 }
   0xa   : > { %p42_p2 = scmp.eq.s32.totalorder %s1031_s30, 0  ;;  %p47_p3 = scmp.ne.s32.totalorder %s1023_s28, %s1019_s27 }
   0xb   : > { %s1119_s13 = scalar_select %p32_p0, %s1027_s29, %s34_s12  }
   0xc   : > { %p43_p4 = por %p42_p2, %p41_p1  ;;  %p48_p5 = scmp.eq.s32.totalorder %s1106_s9, 0 }
   0xd   : > { %p815_p6 = scmp.lt.s32.totalorder %s1031_s30, 3  ;;  %s1128_s15 = sand.u32 1, %s1027_s29  }
   0xe   : > { %p1123_p7 = por %p48_p5, %p47_p3  ;;  %s740_s16 = sshll.u32 %s1128_s15, 2 }
   0xf   : > { %s741_s17 = sshll.u32 %s1031_s30, 6  ;;  %s269_s21 = scalar_lea.vmem [#allocation4], %s740_s16 }
  0x10   : > { %s1353_s14 = scalar_select %p1123_p7, 1, 0 }
  0x11   : > { %s1135_s20 = scalar_lea.hbm %s1343_s0, %s741_s17  ;;  %s276_s22 = sshll.u32 %s269_s21, 4  ;;  %s1137_s22 = int_to_ptr.vmem [resolvable:$true] %s276_s22 }
  0x12   : > { %p1139_p8 = pnand %p815_p6, %p43_p4  ;;  %s266_s24 = scalar_lea.sflag [#allocation5], %s1128_s15 }
  0x13   : > { %s873_s25 = scalar_lea.hbm %s1135_s20, 64  ;;  %s878_s11 = scalar_lea.hbm %s1343_s0, 192 }
  0x14   : > { %p874_p11 = scmp.ne.s32.totalorder %s1135_s20, %s873_s25  ;;  %p875_p12 = pneg %p1139_p8 }
  0x15   : > { %p879_p1 = scmp.lt.u32.totalorder %s1135_s20, %s1343_s0  ;;  %p880_p2 = scmp.lt.u32.totalorder %s878_s11, %s873_s25 }
  0x16   : > { %p876_p13 = pnand %p875_p12, %p874_p11  ;;  %p882_p4 = scmp.lt.u32.totalorder %s873_s25, %s1135_s20 }
  0x17   : > { %p881_p3 = por %p880_p2, %p879_p1 }
  0x18   : > { %p877_p0 = pneg %p876_p13 }
  0x19   : > { %p883_p5 = por %p882_p4, %p881_p3 }
  0x1b   : > { %p884_p6 = pnand %p883_p5, %p877_p0 }
  0x1d   : > { %887 = shalt.err (!%p884_p6)
}
  0x1e   : > { %s888_s17 = scalar_lea.vmem %s1137_s22, 64  ;;  %s1033_s18 = smov [#allocation4]  }
  0x1f   : > { %p889_p11 = scmp.ne.s32.totalorder %s1137_s22, %s888_s17  ;;  %s893_s19 = sshll.u32 %s1033_s18, 4  ;;  %s894_s19 = int_to_ptr.vmem [resolvable:$false] %s893_s19 }
  0x20   : > { %s895_s21 = scalar_lea.vmem %s894_s19, 128  ;;  %p896_p10 = scmp.lt.s32.totalorder %s1137_s22, %s894_s19 }
  0x21   : > { %p891_p13 = pnand %p889_p11, %p875_p12  ;;  %p897_p1 = scmp.lt.s32.totalorder %s895_s21, %s888_s17 }
  0x23   : > { %p892_p9 = pneg %p891_p13  ;;  %p898_p2 = por %p897_p1, %p896_p10 }
  0x25   : > { %p899_p3 = pnand %p898_p2, %p892_p9 }
  0x27   : > { %902 = shalt.err (!%p899_p3)
}
  0x28   : > { %811 = dma.hbm_to_vmem [thread:$0]  (!%p1139_p8), %s1135_s20, 64, %s1137_s22, %s266_s24  }
  0x29   : > { %p1355_p0 = scmp.lt.s32.totalorder %s1031_s30, 4  ;;  %p1356_p4 = scmp.ge.s32.totalorder %s1031_s30, 1 }
  0x2a   : > { %s742_s26 = sshll.u32 %s1128_s15, 3  ;;  %s743_s27 = sshll.u32 %s1031_s30, 7 }
  0x2b   : > { %p1175_p5 = pnand %p1356_p4, %p1355_p0  ;;  %s1184_s16 = scalar_lea.hbm %s1344_s1, %s743_s27 }
  0x2c   : > { %s287_s17 = scalar_lea.vmem [#allocation7], %s742_s26  ;;  %s284_s20 = scalar_lea.sflag [#allocation8], %s1128_s15 }
  0x2d   : > { %s1357_s25 = scalar_select %p1175_p5, 1, 0 }
  0x2e   : > { %s294_s18 = sshll.u32 %s287_s17, 4  ;;  %s903_s22 = scalar_lea.hbm %s1184_s16, 128  ;;  %s295_s18 = int_to_ptr.vmem [resolvable:$true] %s294_s18 }
  0x2f   : > { %p904_p9 = scmp.ne.s32.totalorder %s1184_s16, %s903_s22  ;;  %s908_s19 = scalar_lea.hbm %s1344_s1, 384 }
  0x30   : > { %p909_p11 = scmp.lt.u32.totalorder %s1184_s16, %s1344_s1  ;;  %p910_p13 = scmp.lt.u32.totalorder %s908_s19, %s903_s22 }
  0x31   : > { %p906_p10 = pnand %p904_p9, %p875_p12  ;;  %p912_p2 = scmp.lt.u32.totalorder %s903_s22, %s1184_s16 }
  0x32   : > { %p911_p1 = por %p910_p13, %p909_p11 }
  0x33   : > { %p907_p6 = pneg %p906_p10 }
  0x34   : > { %p913_p3 = por %p912_p2, %p911_p1 }
  0x36   : > { %p914_p0 = pnand %p913_p3, %p907_p6 }
  0x38   : > { %917 = shalt.err (!%p914_p0)
}
  0x39   : > { %s918_s15 = scalar_lea.vmem %s295_s18, 128  ;;  %s1034_s26 = smov [#allocation7]  }
  0x3a   : > { %p919_p4 = scmp.ne.s32.totalorder %s295_s18, %s918_s15  ;;  %s923_s11 = sshll.u32 %s1034_s26, 4  ;;  %s924_s11 = int_to_ptr.vmem [resolvable:$false] %s923_s11 }
  0x3b   : > { %s925_s12 = scalar_lea.vmem %s924_s11, 256  ;;  %p926_p7 = scmp.lt.s32.totalorder %s295_s18, %s924_s11 }
  0x3c   : > { %p921_p9 = pnand %p919_p4, %p875_p12  ;;  %p927_p5 = scmp.lt.s32.totalorder %s925_s12, %s918_s15 }
  0x3e   : > { %p922_p10 = pneg %p921_p9  ;;  %p928_p11 = por %p927_p5, %p926_p7 }
  0x40   : > { %p929_p13 = pnand %p928_p11, %p922_p10 }
  0x42   : > { %932 = shalt.err (!%p929_p13)
}
  0x43   : > { %814 = dma.hbm_to_vmem [thread:$0]  (!%p1139_p8), %s1184_s16, 128, %s295_s18, %s284_s20  }
  0x44   : > { %p1358_p6 = scmp.ne.s32.totalorder %s1357_s25, 0 }
  0x45   : > { %s319_s17 = sand.u32 (!%p1358_p6), 1, %s1023_s28   ;;  %p1359_p12 = scmp.ne.s32.totalorder (!%p1358_p6), %s1353_s14, 0 }
  0x46   : > { %317 = sbr.rel (%p1358_p6) target bundleno = 717 (0x2cd), region = 44  ;;  %s745_s22 = sshll.u32 (!%p1358_p6), %s319_s17, 2 }
  0x47   : > { %s320_s30 = scalar_lea.sflag (!%p1358_p6), [#allocation5], %s319_s17  ;;  %s1209_s24 = scalar_lea.vmem (!%p1358_p6), [#allocation4], %s745_s22 }
  0x4d   : > { %1002 = dma.done.wait (%p1359_p12), %s320_s30, 64  }
  0x4e   : > { %1004 = vsyncadd (%p1359_p12), %s320_s30, 4294967232  ;;  %s746_s19 = sshll.u32 %s319_s17, 3  ;;  %s329_s23 = scalar_lea.sflag [#allocation8], %s319_s17 }
  0x4f   : > { %s1215_s21 = scalar_lea.vmem [#allocation7], %s746_s19 }
  0x50   : > { %1006 = dma.done.wait (%p1359_p12), %s329_s23, 128  }
  0x51   : > { %1008 = vsyncadd (%p1359_p12), %s329_s23, 4294967168  ;;  %p377_p7 = scmp.lt.s32.totalorder %s1106_s9, 2  ;;  %p750_p8 = scmp.ne.s32.totalorder %s1106_s9, 0 }
  0x52   : > { %vm394_vm0 = vcmask (!%p750_p8), 0   ;;  %vm396_vm1 = vcmask (!%p750_p8), 16384   ;;  %v1035_v0 = vmov (!%p750_p8), -1e+30   ;;  %v1036_v1 = vmov (!%p750_p8), 0.0  }
  0x53   : > { %s378_s25 = scalar_select %p377_p7, %s1106_s9, 2 }
  0x54   : > { %393 = sbr.rel (%p750_p8) target bundleno = 91 (0x5b), region = 56  ;;  %395 = vst.msk [vmem:[#allocation2] sm:$0x1] (!%p750_p8), %vm394_vm0, %v1035_v0 }
  0x55   : > { %s1223_s16 = sshll.u32 %s378_s25, 3  ;;  %397 = vst.msk [vmem:[#allocation3] sm:$0x1] (!%p750_p8), %vm396_vm1, %v1036_v1 }
  0x56   : > { %s380_s27 = scalar_lea.vmem %s1345_s2, %s1223_s16  ;;  %s384_s11 = scalar_lea.vmem %s1346_s3, %s1223_s16 }
  0x57   : > { %s388_s17 = scalar_lea.vmem %s1349_s6, %s1223_s16 }
  0x5b PF: > { %v861_v2 = vld [vmem:[%s1347_s4] sm:$0xff]   ;;  %v1037_v3 = vmov 0.0   ;;  %v862_v4 = vld [vmem:[%s1347_s4 + $0x8] sm:$0xff]   ;;  %vm1038_vm2 = vmmov 0   ;;  %v863_v5 = vld [vmem:[%s1347_s4 + $0x10] sm:$0xff]   ;;  %v1039_v20 = vmov 0   ;;  %v532_v26 = vlaneseq }
  0x5c   : > { %776 = vmatprep.subr.bf16.mxu0 %v1037_v3  ;;  %792 = vmatprep.mubr.msk.bf16.mxu0 %vm1038_vm2, %v1037_v3  ;;  %v864_v6 = vld [vmem:[%s1347_s4 + $0x18] sm:$0xff]   ;;  %v865_v7 = vld [vmem:[%s1347_s4 + $0x20] sm:$0xff]   ;;  %v866_v8 = vld [vmem:[%s1347_s4 + $0x28] sm:$0xff]   ;;  %vm517_vm4 = vcmask 7168   ;;  %vm569_vm5 = vcmask 0   ;;  %vm547_vm6 = vcmask 23552  }
  0x5d   : > { %777 = vmatpush3.bf16.msra.mxu0 %v861_v2  ;;  %v867_v9 = vld [vmem:[%s1347_s4 + $0x30] sm:$0xff]   ;;  %v868_v10 = vld [vmem:[%s1347_s4 + $0x38] sm:$0xff]   ;;  %v398_v11 = vld [vmem:[%s1209_s24] sm:$0xf]  ;;  %860 = vset.pattern.permute.xlu1 %v1039_v20  ;;  %v533_v29 = vshrl.u32 %v532_v26, 7  ;;  %vm567_vm7 = vcmask 16384  }
  0x5e   : > { %778 = vmatprep.subr.bf16.mxu0 %v1037_v3  ;;  %v751_v12 = vld [vmem:[%s1348_s5] ss:$0 sm:$0xff]  ;;  %v510_v14 = vld [vmem:[%s1215_s21] sm:$0xff]  ;;  %859 = vset.pattern.permute.xlu0 %v1039_v20  ;;  %v555_v53 = vld [vmem:[#allocation3] sm:$0x1]  ;;  %p760_p5 = scmp.ne.s32.totalorder %s1106_s9, 2 }
  0x5f   : > { %v514_v21 = vld [vmem:[%s384_s11] sm:$0xff]  ;;  %v534_v33 = vsub.s32 0, %v533_v29 }
  0x60   : > { %vm515_vm3 = vcmp.gt.f32.partialorder %v514_v21, 0.5  ;;  %v519_v32 = vld [vmem:[#allocation2] sm:$0x1] }
  0x61   : > { %779 = vmatpush3.bf16.msra.mxu0 %v862_v4  ;;  %v540_v43 = vld [vmem:[%s380_s27] sm:$0xff] }
  0x62   : > { %780 = vmatprep.subr.bf16.mxu0 %v1037_v3 }
  0x65   : > { %781 = vmatpush3.bf16.msra.mxu0 %v863_v5 }
  0x66   : > { %782 = vmatprep.subr.bf16.mxu0 %v1037_v3 }
  0x69   : > { %783 = vmatpush3.bf16.msra.mxu0 %v864_v6 }
  0x6a   : > { %784 = vmatprep.subr.bf16.mxu0 %v1037_v3 }
  0x6d   : > { %785 = vmatpush3.bf16.msra.mxu0 %v865_v7 }
  0x6e   : > { %786 = vmatprep.subr.bf16.mxu0 %v1037_v3 }
  0x71   : > { %787 = vmatpush3.bf16.msra.mxu0 %v866_v8 }
  0x72   : > { %788 = vmatprep.subr.bf16.mxu0 %v1037_v3 }
  0x75   : > { %789 = vmatpush3.bf16.msra.mxu0 %v867_v9 }
  0x76   : > { %790 = vmatprep.subr.bf16.mxu0 %v1037_v3 }
  0x79   : > { %791 = vmatpush3.bf16.msra.mxu0 %v868_v10 }
  0x7c   : > { %793 = vmatmul.mubr.bf16.vlgmr.msra.gmra.mrb[0].mxu0 %v398_v11 }
 0x14f   : > { %v504_v13 = vpop.f32.mrb[0].mxu0 }
 0x150   : > { %v505_v15 = vadd.f32 %v751_v12, %v504_v13  ;;  %v794_v16 = vpop.f32.mrb[1].mxu0 }
 0x151   : > { %v507_v17 = vpop.f32.mrb[2].mxu0 }
 0x152   : > { %v795_v18 = vpop.f32.mrb[3].mxu0  ;;  %v511_v19 = vmul.f32 %v510_v14, %v505_v15 }
 0x154   : > { %512 = vadd.xlane.f32.xlu0 %v511_v19 }
 0x1e1   : > { %v513_v22 = vpop.xlane.xlu0 %512 }
 0x1e2   : > { %v516_v23 = vsel %vm515_vm3, %v513_v22, -1e+30 }
 0x1e3   : > { %518 = vst.msk [vmem:[%s388_s17] sm:$0xff] %vm517_vm4, %v516_v23  ;;  %v520_v24 = vsel %vm517_vm4, %v516_v23, -inf }
 0x1e4   : > { %v521_v25 = vrot.slane %v520_v24, 4 }
 0x1e6   : > { %v522_v27 = vmax.f32 %v520_v24, %v521_v25 }
 0x1e8   : > { %v523_v28 = vrot.slane %v522_v27, 2 }
 0x1ea   : > { %v524_v30 = vmax.f32 %v522_v27, %v523_v28 }
 0x1ec   : > { %v525_v31 = vrot.slane %v524_v30, 1 }
 0x1ee   : > { %v526_v34 = vmax.f32 %v524_v30, %v525_v31 }
 0x1f0   : > { %v527_v35 = vmax.f32 %v519_v32, %v526_v34 }
 0x1f2   : > { %v535_v36 = vrot.slane %v527_v35, %v534_v33  ;;  %570 = vst.msk [vmem:[#allocation2] sm:$0x1] %vm569_vm5, %v527_v35  ;;  %v528_v37 = vsub.f32 %v519_v32, %v527_v35 }
 0x1f4   : > { %v537_v38 = vsub.f32 %v516_v23, %v535_v36  ;;  %v529_v39 = vmul.f32 1.442695, %v528_v37 }
 0x1f6   : > { %v538_v40 = vmul.f32 1.442695, %v537_v38  ;;  %869 = vpow2.f32 %v529_v39 }
 0x1f8   : > { %871 = vpow2.f32 %v538_v40 }
 0x1f9   : > { %v575_v58 = vld [vmem:[#allocation2] sm:$0x1] (!%p760_p5) }
 0x1fa   : > { %576 = vst.msk [vmem:[#allocation9] sm:$0x1] (!%p760_p5), %vm569_vm5, %v575_v58 }
 0x200   : > { %v870_v41 = vpop.eup %869 }
 0x201   : > { %558 = vperm.xlu1 %860, %v870_v41  }
 0x202   : > { %v872_v42 = vpop.eup %871 }
 0x203   : > { %543 = vperm.xlu0 %859, %v872_v42  }
 0x280   : > { %v559_v49 = vpop.permute.xlu1 %558 }
 0x281   : > { %v564_v51 = vrot.slane %v559_v49, %v534_v33 }
 0x282   : > { %v544_v44 = vpop.permute.xlu0 %543 }
 0x283   : > { %v546_v45 = vmul.f32 %v544_v44, %v540_v43  ;;  %v565_v55 = vmul.f32 %v564_v51, %v555_v53 }
 0x285   : > { %v548_v46 = vsel %vm547_vm6, %v546_v45, 0.0 }
 0x286   : > { %v549_v47 = vrot.slane %v548_v46, 4 }
 0x288   : > { %v550_v48 = vadd.f32 %v549_v47, %v548_v46 }
 0x28a   : > { %v551_v50 = vrot.slane %v550_v48, 2 }
 0x28c   : > { %v552_v52 = vadd.f32 %v551_v50, %v550_v48 }
 0x28e   : > { %v553_v54 = vrot.slane %v552_v52, 1  ;;  %574 = sbr.rel (%p760_p5) target bundleno = 669 (0x29d), region = 60 }
 0x290   : > { %v554_v56 = vadd.f32 %v553_v54, %v552_v52 }
 0x292   : > { %v566_v57 = vadd.f32 %v565_v55, %v554_v56 }
 0x294   : > { %568 = vst.msk [vmem:[#allocation3] sm:$0x1] %vm567_vm7, %v566_v57 }
 0x29b   : > { %v577_v59 = vld [vmem:[#allocation3] sm:$0x1] }
 0x29c   : > { %578 = vst.msk [vmem:[#allocation10] sm:$0x1] %vm567_vm7, %v577_v59 }
 0x29d PF: > { %p816_p1 = scmp.eq.s32.totalorder %s1106_s9, 2  ;;  %s1040_s16 = smov [#allocation9]  }
 0x29e   : > { %s593_s27 = sshll.u32 %s1040_s16, 4  ;;  %s1041_s12 = smov [#allocation10]   ;;  %s594_s27 = int_to_ptr.vmem [resolvable:$true] %s593_s27 }
 0x29f   : > { %s604_s14 = sshll.u32 %s1041_s12, 4  ;;  %s933_s22 = scalar_lea.vmem %s594_s27, 16  ;;  %s605_s14 = int_to_ptr.vmem [resolvable:$true] %s604_s14 }
 0x2a0   : > { %p934_p2 = scmp.ne.s32.totalorder %s594_s27, %s933_s22  ;;  %s939_s30 = scalar_lea.vmem %s594_s27, 32 }
 0x2a1   : > { %p940_p4 = scmp.lt.s32.totalorder %s594_s27, %s594_s27  ;;  %p941_p9 = scmp.lt.s32.totalorder %s939_s30, %s933_s22 }
 0x2a2   : > { %p935_p3 = pnand %p934_p2, %p816_p1 }
 0x2a3   : > { %p942_p10 = por %p941_p9, %p940_p4 }
 0x2a4   : > { %p936_p0 = pneg %p935_p3 }
 0x2a6   : > { %p943_p11 = pnand %p942_p10, %p936_p0 }
 0x2a8   : > { %946 = shalt.err (!%p943_p11)
}
 0x2a9   : > { %s947_s25 = scalar_lea.hbm %s1350_s7, 16 }
 0x2aa   : > { %p948_p13 = scmp.ne.s32.totalorder %s1350_s7, %s947_s25  ;;  %p953_p7 = scmp.lt.u32.totalorder %s947_s25, %s1350_s7 }
 0x2ac   : > { %p949_p6 = pnand %p948_p13, %p816_p1 }
 0x2ae   : > { %p950_p12 = pneg %p949_p6 }
 0x2b0   : > { %p955_p8 = pnand %p953_p7, %p950_p12 }
 0x2b2   : > { %958 = shalt.err (!%p955_p8)
}
 0x2b3   : > { %801 = dma.vmem_to_hbm [thread:$0]  (%p816_p1), %s594_s27, 16, %s1350_s7, [#allocation6]  }
 0x2b4   : > { %s959_s11 = scalar_lea.vmem %s605_s14, 16  ;;  %s965_s17 = scalar_lea.vmem %s605_s14, 32 }
 0x2b5   : > { %p960_p5 = scmp.ne.s32.totalorder %s605_s14, %s959_s11  ;;  %p966_p0 = scmp.lt.s32.totalorder %s605_s14, %s605_s14 }
 0x2b6   : > { %p967_p4 = scmp.lt.s32.totalorder %s965_s17, %s959_s11 }
 0x2b7   : > { %p961_p2 = pnand %p960_p5, %p816_p1 }
 0x2b8   : > { %p968_p9 = por %p967_p4, %p966_p0 }
 0x2b9   : > { %p962_p3 = pneg %p961_p2 }
 0x2bb   : > { %p969_p10 = pnand %p968_p9, %p962_p3 }
 0x2bd   : > { %972 = shalt.err (!%p969_p10)
}
 0x2be   : > { %s973_s22 = scalar_lea.hbm %s1351_s8, 16 }
 0x2bf   : > { %p974_p11 = scmp.ne.s32.totalorder %s1351_s8, %s973_s22  ;;  %p979_p12 = scmp.lt.u32.totalorder %s973_s22, %s1351_s8 }
 0x2c1   : > { %p975_p13 = pnand %p974_p11, %p816_p1 }
 0x2c3   : > { %p976_p6 = pneg %p975_p13 }
 0x2c5   : > { %p981_p7 = pnand %p979_p12, %p976_p6 }
 0x2c7   : > { %984 = shalt.err (!%p981_p7)
}
 0x2c8   : > { %803 = dma.vmem_to_hbm [thread:$0]  (%p816_p1), %s605_s14, 16, %s1351_s8, [#allocation11]  }
 0x2c9   : > { %1010 = dma.done.wait (%p816_p1), [#allocation6], 16  }
 0x2ca   : > { %1012 = vsyncadd (%p816_p1), [#allocation6], 4294967280 }
 0x2cb   : > { %1014 = dma.done.wait (%p816_p1), [#allocation11], 16  }
 0x2cc   : > { %1016 = vsyncadd (%p816_p1), [#allocation11], 4294967280 }
 0x2cd PF: > { %p24_p8 = scmp.ge.s32.totalorder %s1109_s10, 5   ;;  %s1360_s27 = smov %s1023_s28 }
 0x2ce   : > { %s1361_s28 = smov %s1027_s29  ;;  %s1362_s29 = smov %s1119_s13 }
 0x2cf   : > { %s1363_s30 = smov %s1109_s10  ;;  %26 = sbr.rel (!%p24_p8) target bundleno = 7 (0x7), region = 128 }
 0x2d6   :  { %628 = vsyncpa [#allocation5], 1 }
 0x2d7   :  { %630 = vsyncpa [#allocation5 + $0x1], 1 }
 0x2d8   :  { %631 = vsyncpa [#allocation8], 1 }
 0x2d9   :  { %633 = vsyncpa [#allocation8 + $0x1], 1 }
 0x2da   :  { %634 = vsyncpa [#allocation6], 1 }
 0x2db   :  { %636 = vsyncpa [#allocation6 + $0x1], 1 }
 0x2dc   :  { %637 = vsyncpa [#allocation11], 1 }

</bundles_post_ra>
